<compile_context>
chip_gen: v5e
topology: v5e:2x2
jax: 0.10.0
libtpu: 0.0.40
codegen_flags: <defaults>
</compile_context>

<pallas_src>
import jax
import jax.numpy as jnp
from jax import lax
from jax.experimental import pallas as pl
from jax.experimental.pallas import tpu as pltpu

EPS = 1e-5


# ----------------------------------------------------------------------------
# Pallas kernel: row-normalize(x) folded around a single MXU matmul
# ----------------------------------------------------------------------------
def dist_linear_kernel(x_ref, wt_ref, ws_ref, out_ref):
    """x: (TN, D) native dtype; wt: (D, TC) = v.T tile; ws: (1, TC) f32; out: (TN, TC)."""
    x = x_ref[...]

    # Per-row sum of squares in f32 regardless of operand dtype (precision for large D).
    xf = x.astype(jnp.float32)
    x_sq = jnp.sum(xf * xf, axis=1, keepdims=True)                     # (TN, 1)
    # 1 / (||x|| + 1e-5): sqrt + approximate reciprocal both land on the EUP slot.
    x_inv = pl.reciprocal(jnp.sqrt(x_sq) + EPS, approx=True)           # (TN, 1)

    # Single MXU matmul on the raw (un-normalized) operands; f32 accumulation.
    raw = jnp.dot(x, wt_ref[...], preferred_element_type=jnp.float32)  # (TN, TC)

    # ws already contains scale_factor * g / ||v||  (hoisted to the wrapper).
    out_ref[...] = (x_inv * raw * ws_ref[...]).astype(out_ref.dtype)


# ----------------------------------------------------------------------------
# Wrapper
# ----------------------------------------------------------------------------
def _round_up(x, m):
    return ((x + m - 1) // m) * m


def dist_linear(x, weight_v, weight_g, *, out_dtype=None):
    """x: (N, indim)  weight_v: (outdim, indim)  weight_g: (outdim,) -> (N, outdim)."""
    N, D = x.shape
    C = weight_v.shape[0]
    scale = 2.0 if C <= 200 else 10.0
    out_dtype = out_dtype if out_dtype is not None else x.dtype

    # ---- hoisted, grid-invariant column scale:  scale * g / ||v||_row (f32) -------
    v32 = weight_v.astype(jnp.float32)
    w_scale = scale * weight_g.astype(jnp.float32).reshape(-1) * lax.rsqrt(
        jnp.sum(v32 * v32, axis=1))                                     # (C,)

    # Operands stay in their native dtype (bf16 = MXU fast path, halves HBM/VMEM).
    wt = weight_v.T                                                     # (D, C)

    # ---- tiling --------------------------------------------------------------------
    # Batch rows: big MXU-friendly tiles; keep >=2 parallel tiles when N is large so
    # v7x's two TensorCores both get work. Small N -> one full-extent block.
    if N <= 256:
        tile_n = N
    elif N <= 1024:
        tile_n = 256
    else:
        tile_n = 512
    # Classes: lane-dense (multiple of 128); tile the class axis when it is large.
    c_pad0 = _round_up(C, 128)
    tile_c = c_pad0 if c_pad0 <= 1024 else 512

    # Explicit VMEM budget (v7x has only 64 MiB physical); shrink tiles if needed.
    in_b = jnp.dtype(x.dtype).itemsize
    out_b = jnp.dtype(out_dtype).itemsize

    def vmem_bytes(tn, tc):
        return (2 * (tn * D + D * tc) * in_b        # double-buffered x / weight tiles
                + 2 * tc * 4                        # w_scale tile
                + 2 * tn * tc * out_b               # double-buffered output tile
                + tn * tc * 4)                      # f32 matmul result
    BUDGET = 40 << 20
    while vmem_bytes(tile_n, tile_c) > BUDGET and tile_c > 128:
        tile_c = max(128, (tile_c // 2) // 128 * 128)
    while vmem_bytes(tile_n, tile_c) > BUDGET and tile_n > 128 and tile_n < N:
        tile_n //= 2

    n_pad = _round_up(N, tile_n)
    c_pad = _round_up(C, tile_c)

    # ---- zero padding (padded rows/cols are exactly sliced away below) --------------
    if n_pad != N:
        x = jnp.pad(x, ((0, n_pad - N), (0, 0)))
    if c_pad != C:
        wt = jnp.pad(wt, ((0, 0), (0, c_pad - C)))
        w_scale = jnp.pad(w_scale, (0, c_pad - C))
    ws = w_scale.reshape(1, c_pad)

    grid = (n_pad // tile_n, c_pad // tile_c)

    out = pl.pallas_call(
        dist_linear_kernel,
        out_shape=jax.ShapeDtypeStruct((n_pad, c_pad), out_dtype),
        grid=grid,
        in_specs=[
            pl.BlockSpec((tile_n, D), lambda i, j: (i, 0)),
            pl.BlockSpec((D, tile_c), lambda i, j: (0, j)),
            pl.BlockSpec((1, tile_c), lambda i, j: (0, j)),
        ],
        out_specs=pl.BlockSpec((tile_n, tile_c), lambda i, j: (i, j)),
        compiler_params=pltpu.CompilerParams(
            dimension_semantics=("parallel", "parallel"),
            vmem_limit_bytes=int(min(64 << 20,
                                     max(32 << 20, 2 * vmem_bytes(tile_n, tile_c)))),
        ),
    )(x, wt, ws)

    return out[:N, :C]


# ----------------------------------------------------------------------------
# Example / self-check
# ----------------------------------------------------------------------------
if __name__ == "__main__":
    # Small shapes consistent with the module: batch=16, indim=64, outdim=100
    # (outdim <= 200 -> scale_factor = 2).
    N, D, C = 16, 64, 100
    key = jax.random.PRNGKey(0)
    kx, kw, kg = jax.random.split(key, 3)

    x = jax.random.normal(kx, (N, D), dtype=jnp.float32)
    weight_v = jax.random.normal(kw, (C, D), dtype=jnp.float32) * 0.1
    # WeightNorm.apply initializes g = ||v||_row; perturb it so g*v/||v|| != v and the
    # full weight-norm path is exercised.
    weight_g = jnp.sqrt(jnp.sum(weight_v * weight_v, axis=1)) * (
        1.0 + 0.1 * jax.random.normal(kg, (C,), dtype=jnp.float32))

    # Pure-JAX reference mirroring the torch forward exactly.
    def ref_fn(xr, v, g):
        xn = xr / (jnp.linalg.norm(xr, axis=1, keepdims=True) + EPS)
        w = g[:, None] * v / jnp.linalg.norm(v, axis=1, keepdims=True)
        return 2.0 * (xn @ w.T)

    ref = ref_fn(x, weight_v, weight_g)

    # f32 operand path.
    out = dist_linear(x, weight_v, weight_g)
    jax.block_until_ready(out)
    assert out.shape == (N, C)
    # Tolerance covers the EUP approximate reciprocal used for 1/(||x||+eps).
    assert jnp.allclose(out, ref, atol=2e-3, rtol=2e-3), \
        float(jnp.max(jnp.abs(out - ref)))

    # bf16 operand path (MXU fast path), f32 accumulation and f32 output.
    out_bf = dist_linear(x.astype(jnp.bfloat16), weight_v.astype(jnp.bfloat16),
                         weight_g, out_dtype=jnp.float32)
    jax.block_until_ready(out_bf)
    assert jnp.allclose(out_bf, ref, atol=6e-2, rtol=6e-2), \
        float(jnp.max(jnp.abs(out_bf - ref)))

    print("KERNEL_OK")
</pallas_src>

<mosaic_0001>
module attributes {stable_mosaic.version = 11 : i64} {
  func.func @dist_linear_kernel(%arg0: i32, %arg1: i32, %arg2: memref<16x64xf32, #tpu.memory_space<vmem>>, %arg3: memref<64x128xf32, #tpu.memory_space<vmem>>, %arg4: memref<1x128xf32, #tpu.memory_space<vmem>>, %arg5: memref<16x128xf32, #tpu.memory_space<vmem>>) attributes {dimension_semantics = [#tpu.dimension_semantics<parallel>, #tpu.dimension_semantics<parallel>], iteration_bounds = array<i64: 1, 1>, scalar_prefetch = 0 : i64, scratch_operands = 0 : i64, tpu.core_type = #tpu.core_type<tc>, window_params = [{transform_indices = @transform_0, window_bounds = array<i64: 16, 64>}, {transform_indices = @transform_1, window_bounds = array<i64: 64, 128>}, {transform_indices = @transform_2, window_bounds = array<i64: 1, 128>}, {transform_indices = @transform_3, window_bounds = array<i64: 16, 128>}]} {
    %c0 = arith.constant 0 : index
    %c0_0 = arith.constant 0 : index
    %0 = vector.load %arg2[%c0, %c0_0] : memref<16x64xf32, #tpu.memory_space<vmem>>, vector<16x64xf32>
    %1 = arith.mulf %0, %0 : vector<16x64xf32>
    %cst = arith.constant dense<0.000000e+00> : vector<16xf32>
    %2 = vector.multi_reduction <add>, %1, %cst [1] : vector<16x64xf32> to vector<16xf32>
    %3 = vector.shape_cast %2 : vector<16xf32> to vector<16x1xf32>
    %4 = math.sqrt %3 : vector<16x1xf32>
    %cst_1 = arith.constant 9.99999974E-6 : f32
    %5 = vector.broadcast %cst_1 : f32 to vector<16x1xf32>
    %6 = arith.addf %4, %5 : vector<16x1xf32>
    %7 = tpu.reciprocal %6 {approx = true} : vector<16x1xf32> -> vector<16x1xf32>
    %c0_2 = arith.constant 0 : index
    %c0_3 = arith.constant 0 : index
    %8 = vector.load %arg3[%c0_2, %c0_3] : memref<64x128xf32, #tpu.memory_space<vmem>>, vector<64x128xf32>
    %cst_4 = arith.constant dense<0.000000e+00> : vector<16x128xf32>
    %9 = tpu.matmul %0, %8, %cst_4 {dimension_numbers = #tpu.dot_dimension_numbers<[1], [0], [0], [1], [0, 0, 1, 1], [], []>} : vector<16x64xf32>, vector<64x128xf32>, vector<16x128xf32> -> vector<16x128xf32>
    %10 = vector.broadcast %7 : vector<16x1xf32> to vector<16x128xf32>
    %11 = arith.mulf %10, %9 : vector<16x128xf32>
    %c0_5 = arith.constant 0 : index
    %c0_6 = arith.constant 0 : index
    %12 = vector.load %arg4[%c0_5, %c0_6] : memref<1x128xf32, #tpu.memory_space<vmem>>, vector<1x128xf32>
    %13 = vector.broadcast %12 : vector<1x128xf32> to vector<16x128xf32>
    %14 = arith.mulf %11, %13 : vector<16x128xf32>
    %c0_7 = arith.constant 0 : index
    %c0_8 = arith.constant 0 : index
    %15 = vector.load %arg5[%c0_7, %c0_8] : memref<16x128xf32, #tpu.memory_space<vmem>>, vector<16x128xf32>
    tpu.vector_store %arg5[%c0_7, %c0_8], %14 {strides = array<i32>} : memref<16x128xf32, #tpu.memory_space<vmem>>, vector<16x128xf32>,
    return
  }
  func.func @transform_0(%arg0: i32, %arg1: i32) -> (i32, i32) {
    %c0_i32 = arith.constant 0 : i32
    %c0_i32_0 = arith.constant 0 : i32
    return %arg0, %c0_i32 : i32, i32
  }
  func.func @transform_1(%arg0: i32, %arg1: i32) -> (i32, i32) {
    %c0_i32 = arith.constant 0 : i32
    %c0_i32_0 = arith.constant 0 : i32
    return %c0_i32, %arg1 : i32, i32
  }
  func.func @transform_2(%arg0: i32, %arg1: i32) -> (i32, i32) {
    %c0_i32 = arith.constant 0 : i32
    %c0_i32_0 = arith.constant 0 : i32
    return %c0_i32, %arg1 : i32, i32
  }
  func.func @transform_3(%arg0: i32, %arg1: i32) -> (i32, i32) {
    %c0_i32 = arith.constant 0 : i32
    return %arg0, %arg1 : i32, i32
  }
}

</mosaic_0001>

<bundles_post_ra>
// kernel: tpu_custom_call.1
= control target key start
LH: loop header
LB: loop body
LE: loop exit
PB: predicated region body
PF: predicated region fallthrough
CT: control target
= control target key end

     0   :  { %8 = vsyncpa [#allocation3], 0  ;;  %s305_s0 = inlined_call_operand.hbm [shape: f32[16,64], index: 0, kind: input, shape index: {}]   ;;  %s306_s1 = inlined_call_operand.hbm [shape: f32[64,128], index: 1, kind: input, shape index: {}]   ;;  %s307_s2 = inlined_call_operand.vmem [shape: f32[1,128], index: 2, kind: input, shape index: {}]   ;;  %s308_s3 = inlined_call_operand.hbm [shape: f32[16,128], index: 3, kind: output, shape index: {}]  }
   0x1   :  { %9 = vsyncpa [#allocation6], 0 }
   0x2   :  { %10 = vsyncpa [#allocation4], 0  ;;  %s15_s14 = sshll.u32 %s305_s0, 4  ;;  %s255_s15 = smov [#allocation2]   ;;  %s16_s14 = int_to_ptr.hbm [resolvable:$true] %s15_s14 }
   0x3   :  { %s17_s16 = sshll.u32 %s255_s15, 4  ;;  %s28_s19 = sshll.u32 %s306_s1, 4  ;;  %s18_s16 = int_to_ptr.vmem [resolvable:$true] %s17_s16  ;;  %s29_s19 = int_to_ptr.hbm [resolvable:$true] %s28_s19 }
   0x4   :  { %s256_s20 = smov 128   ;;  %s257_s21 = smov 8  }
   0x5   :  { %23 = dma.hbm_to_vmem [thread:$0]  %s16_s14, 256, %s18_s16, [#allocation3], %s256_s20, %s256_s20, %s257_s21  }
   0x6   :  { %s258_s22 = smov [#allocation5]  }
   0x7   :  { %s30_s23 = sshll.u32 %s258_s22, 4  ;;  %s31_s23 = int_to_ptr.vmem [resolvable:$true] %s30_s23 }
   0x8   :  { %36 = dma.hbm_to_vmem [thread:$0]  %s29_s19, 1024, %s31_s23, [#allocation6], %s256_s20, %s256_s20, %s257_s21  }
   0x9   :  { %249 = dma.done.wait [#allocation3], 256  }
   0xa   :  { %250 = vsyncadd [#allocation3], 4294967040 }
   0xb   :  { %251 = dma.done.wait [#allocation6], 1024  }
   0xc   :  { %252 = vsyncadd [#allocation6], 4294966272  ;;  %v47_v0 = vld [vmem:[#allocation2] sm:$0xff]  ;;  %vm51_vm0 = vcmask 523264   ;;  %v93_v1 = vld [vmem:[#allocation5 + $0x38] sm:$0xff]  ;;  %s259_s24 = smov [#allocation7]  }
   0xd   :  { %v92_v2 = vld [vmem:[#allocation5 + $0x30] sm:$0xff]  ;;  %v49_v3 = vmul.f32 %v47_v0, %v47_v0  ;;  %108 = vmatpush.msra.mxu0 %v93_v1  ;;  %155 = vmatpush.msra.mxu1 %v93_v1  ;;  %v48_v4 = vld [vmem:[#allocation2 + $0x8] sm:$0xff]  ;;  %v91_v5 = vld [vmem:[#allocation5 + $0x28] sm:$0xff]  ;;  %s137_s25 = sshll.u32 %s259_s24, 4  ;;  %s139_s28 = sshll.u32 %s308_s3, 4  ;;  %s138_s25 = int_to_ptr.vmem [resolvable:$true] %s137_s25  ;;  %s140_s28 = int_to_ptr.hbm [resolvable:$true] %s139_s28 }
   0xe   :  { %v90_v7 = vld [vmem:[#allocation5 + $0x20] sm:$0xff]  ;;  %v50_v8 = vmul.f32 %v48_v4, %v48_v4  ;;  %v89_v9 = vld [vmem:[#allocation5 + $0x18] sm:$0xff]  ;;  %v88_v10 = vld [vmem:[#allocation5 + $0x10] sm:$0xff] }
   0xf   :  { %v52_v6 = vsel %vm51_vm0, %v49_v3, 0.0  ;;  %109 = vmatpush.msra.mxu0 %v92_v2  ;;  %156 = vmatpush.msra.mxu1 %v92_v2  ;;  %v87_v12 = vld [vmem:[#allocation5 + $0x8] sm:$0xff]  ;;  %v86_v13 = vld [vmem:[#allocation5] sm:$0xff]  ;;  %v168_v37 = vld [vmem:[%s307_s2] ss:$0 sm:$0xff] }
  0x10   :  { %53 = vadd.xlane.f32.xlu0 %v52_v6  ;;  %v55_v11 = vsel %vm51_vm0, %v50_v8, 0.0 }
  0x11   :  { %110 = vmatpush.msra.mxu0 %v91_v5  ;;  %157 = vmatpush.msra.mxu1 %v91_v5 }
  0x13   :  { %111 = vmatpush.msra.mxu0 %v90_v7  ;;  %158 = vmatpush.msra.mxu1 %v90_v7 }
  0x15   :  { %112 = vmatpush.msra.mxu0 %v89_v9  ;;  %159 = vmatpush.msra.mxu1 %v89_v9 }
  0x17   :  { %113 = vmatpush.msra.mxu0 %v88_v10  ;;  %160 = vmatpush.msra.mxu1 %v88_v10 }
  0x18   :  { %56 = vadd.xlane.f32.xlu0 %v55_v11 }
  0x19   :  { %114 = vmatpush.msra.mxu0 %v87_v12  ;;  %161 = vmatpush.msra.mxu1 %v87_v12 }
  0x1b   :  { %115 = vmatpush.msra.mxu0 %v86_v13  ;;  %162 = vmatpush.msra.mxu1 %v86_v13 }
  0x1c   :  { %153 = vmatmul.msk.f32.vlgmr.msra.gmra.mxu0 %vm51_vm0, %v47_v0  ;;  %154 = vmatmul.msk.f32.vlgmr.msra.gmra.mxu1 %vm51_vm0, %v48_v4 }
  0x83   :  { %v54_v14 = vpop.xlane.xlu0 %53 }
  0x84   :  { %169 = vrsqrt.f32 %v54_v14  ;;  %vm65_vm1 = vcmp.eq.f32.partialorder %v54_v14, inf  ;;  %v68_v26 = vand.u32 2147483648, %v54_v14  ;;  %vm67_vm2 = vcmp.eq.f32.partialorder %v54_v14, 0.0 }
  0x8a   :  { %v170_v15 = vpop.eup %169 }
  0x8b   :  { %v59_v16 = vmul.f32 %v170_v15, %v54_v14  ;;  %v57_v17 = vpop.xlane.xlu0 %56 }
  0x8c   :  { %171 = vrsqrt.f32 %v57_v17  ;;  %vm77_vm3 = vcmp.eq.f32.partialorder %v57_v17, inf  ;;  %v80_v34 = vand.u32 2147483648, %v57_v17  ;;  %vm79_vm4 = vcmp.eq.f32.partialorder %v57_v17, 0.0 }
  0x8d   :  { %v60_v18 = vmul.f32 %v170_v15, %v59_v16 }
  0x8f   :  { %v61_v19 = vmul.f32 0.5, %v60_v18 }
  0x91   :  { %v62_v20 = vsub.f32 1.5, %v61_v19 }
  0x92   :  { %v172_v21 = vpop.eup %171 }
  0x93   :  { %v71_v22 = vmul.f32 %v172_v21, %v57_v17  ;;  %v63_v23 = vmul.f32 %v170_v15, %v62_v20 }
  0x95   :  { %v72_v24 = vmul.f32 %v172_v21, %v71_v22  ;;  %v64_v25 = vmul.f32 %v63_v23, %v54_v14 }
  0x97   :  { %v73_v27 = vmul.f32 0.5, %v72_v24  ;;  %v66_v28 = vsel %vm65_vm1, %v54_v14, %v64_v25 }
  0x98   :  { %v69_v29 = vsel %vm67_vm2, %v68_v26, %v66_v28 }
  0x99   :  { %v74_v30 = vsub.f32 1.5, %v73_v27  ;;  %v82_v31 = vadd.f32 1e-05, %v69_v29  ;;  %v117_v35 = vpop.f32.mrf.mxu0  ;;  %v120_v43 = vpop.f32.mrf.mxu1 }
  0x9b   :  { %v75_v32 = vmul.f32 %v172_v21, %v74_v30  ;;  %173 = vrcp.f32 %v82_v31 }
  0x9d   :  { %v76_v33 = vmul.f32 %v75_v32, %v57_v17 }
  0x9f   :  { %v78_v36 = vsel %vm77_vm3, %v57_v17, %v76_v33 }
  0xa0   :  { %v81_v38 = vsel %vm79_vm4, %v80_v34, %v78_v36 }
  0xa1   :  { %v174_v39 = vpop.eup %173  ;;  %v83_v40 = vadd.f32 1e-05, %v81_v38 }
  0xa2   :  { %v123_v41 = vmul.f32 %v174_v39, %v117_v35 }
  0xa3   :  { %175 = vrcp.f32 %v83_v40 }
  0xa4   :  { %v129_v42 = vmul.f32 %v168_v37, %v123_v41 }
  0xa6   :  { %131 = vst [vmem:[#allocation7] sm:$0xff] %v129_v42 }
  0xa9   :  { %v176_v44 = vpop.eup %175 }
  0xaa   :  { %v124_v45 = vmul.f32 %v176_v44, %v120_v43 }
  0xac   :  { %v130_v46 = vmul.f32 %v168_v37, %v124_v45 }
  0xae   :  { %132 = vst [vmem:[#allocation7 + $0x8] sm:$0xff] %v130_v46 }
  0xaf   :  { %145 = dma.vmem_to_hbm [thread:$0]  %s138_s25, 256, %s140_s28, [#allocation4], %s256_s20, %s256_s20, %s257_s21  }
  0xb0   :  { %253 = dma.done.wait [#allocation4], 256  }
  0xb1   :  { %254 = vsyncadd [#allocation4], 4294967040 }
  0xb2   :  { %150 = vsyncpa [#allocation3], 1 }
  0xb3   :  { %151 = vsyncpa [#allocation6], 1 }
  0xb4   :  { %152 = vsyncpa [#allocation4], 1 }

</bundles_post_ra>
